<compile_context>
chip_gen: v7x
topology: tpu7x:2x2x1
jax: 0.10.0
libtpu: 0.0.40
codegen_flags: <defaults>
</compile_context>

<pallas_src>
import jax
import jax.numpy as jnp
from jax.experimental import pallas as pl
from jax.experimental.pallas import tpu as pltpu

_LANES = 128
_MB_ELEMS = 9           # mb is (3, 3) -> 9 elements when flattened
# block_rows must be a multiple of 8 (sublane tiling rule) and of 9 (so the
# tiled-mb pattern repeats exactly once per block) -> multiple of lcm(8,9)=72.
_ROW_QUANTUM = 72
_MAX_BLOCK_ROWS = 1152  # 1152 x 128 x 4 B ≈ 576 KiB per f32 buffer


def _cf_mul_kernel(mb_ref, a_ref, o_ref):
    # Plain aligned elementwise multiply on full (block_rows, 128) tiles.
    # mb_ref has a constant index_map, so it is VMEM-resident across the grid.
    o_ref[...] = mb_ref[...] * a_ref[...]


def _round_up(x: int, m: int) -> int:
    return (x + m - 1) // m * m


def cf_module1_forward(mb: jax.Array, a: jax.Array) -> jax.Array:
    """Pallas implementation of CFModule1.forward: mb * a (broadcast + promote)."""
    assert mb.shape == (3, 3)
    out_shape = jnp.broadcast_shapes(mb.shape, a.shape)
    out_dtype = jnp.result_type(mb.dtype, a.dtype)

    n = 1
    for d in out_shape:
        n *= d

    # ---- wrapper-side layout plumbing (one-time, XLA-fused) ----------------
    rows_needed = pl.cdiv(n, _LANES)
    block_rows = min(_MAX_BLOCK_ROWS, _round_up(rows_needed, _ROW_QUANTUM))
    padded_rows = _round_up(rows_needed, block_rows)
    grid = padded_rows // block_rows
    padded_n = padded_rows * _LANES

    # Broadcast a to the output shape (no-op in the common (B,3,3) case),
    # promote dtype, flatten, zero-pad, and view as lane-dense (rows, 128).
    a_full = jnp.broadcast_to(a, out_shape).astype(out_dtype).reshape(-1)
    a_padded = jnp.pad(a_full, (0, padded_n - n)).reshape(padded_rows, _LANES)

    # Pre-tile mb into one lane-dense block.  Flattened output index k maps to
    # mb.flatten()[k % 9]; because block_rows*128 is a multiple of 9, the same
    # pattern holds for every block, so one resident VMEM tile suffices.
    mb_tile = jnp.tile(
        mb.astype(out_dtype).reshape(-1), (block_rows * _LANES) // _MB_ELEMS
    ).reshape(block_rows, _LANES)

    out = pl.pallas_call(
        _cf_mul_kernel,
        out_shape=jax.ShapeDtypeStruct((padded_rows, _LANES), out_dtype),
        grid=(grid,),
        in_specs=[
            pl.BlockSpec((block_rows, _LANES), lambda i: (0, 0)),  # resident mb
            pl.BlockSpec((block_rows, _LANES), lambda i: (i, 0)),
        ],
        out_specs=pl.BlockSpec((block_rows, _LANES), lambda i: (i, 0)),
        compiler_params=pltpu.CompilerParams(
            dimension_semantics=("parallel",),  # lets v7x shard grid over 2 TCs
        ),
    )(mb_tile, a_padded)

    return out.reshape(-1)[:n].reshape(out_shape)


if __name__ == "__main__":
    key = jax.random.PRNGKey(0)
    k_mb, k_a, k_b = jax.random.split(key, 3)

    # Parameter init mimicking torch.rand(3, 3) (uniform [0, 1)).
    mb = jax.random.uniform(k_mb, (3, 3), dtype=jnp.float32)

    # Small example consistent with the module: batch of 2 (3, 3) matrices.
    a_small = jax.random.uniform(k_a, (2, 3, 3), dtype=jnp.float32)
    out_small = jax.block_until_ready(cf_module1_forward(mb, a_small))
    ref_small = mb[None, :, :] * a_small
    assert out_small.shape == ref_small.shape
    assert jnp.allclose(out_small, ref_small, atol=1e-6), "mismatch (B=2)"

    # Larger batch to exercise the multi-step, lane-dense pipelined grid.
    a_big = jax.random.uniform(k_b, (40000, 3, 3), dtype=jnp.float32)
    out_big = jax.block_until_ready(cf_module1_forward(mb, a_big))
    ref_big = mb[None, :, :] * a_big
    assert jnp.allclose(out_big, ref_big, atol=1e-6), "mismatch (B=40000)"

    # 2-D input exactly (3, 3) — previously a correctness hole.
    a_2d = jax.random.uniform(k_a, (3, 3), dtype=jnp.float32)
    out_2d = jax.block_until_ready(cf_module1_forward(mb, a_2d))
    assert jnp.allclose(out_2d, mb * a_2d, atol=1e-6), "mismatch (2-D)"

    print("KERNEL_OK")
</pallas_src>

<mosaic_0001>
module attributes {stable_mosaic.version = 11 : i64} {
  func.func @_cf_mul_kernel(%arg0: i32, %arg1: memref<72x128xf32, #tpu.memory_space<vmem>>, %arg2: memref<72x128xf32, #tpu.memory_space<vmem>>, %arg3: memref<72x128xf32, #tpu.memory_space<vmem>>) attributes {dimension_semantics = [#tpu.dimension_semantics<parallel>], iteration_bounds = array<i64: 1>, scalar_prefetch = 0 : i64, scratch_operands = 0 : i64, tpu.core_type = #tpu.core_type<tc>, window_params = [{pipeline_mode = #tpu.pipeline_mode<synchronous>, transform_indices = @transform_0, window_bounds = array<i64: 72, 128>}, {transform_indices = @transform_1, window_bounds = array<i64: 72, 128>}, {transform_indices = @transform_2, window_bounds = array<i64: 72, 128>}]} {
    %c0 = arith.constant 0 : index
    %c0_0 = arith.constant 0 : index
    %0 = vector.load %arg1[%c0, %c0_0] : memref<72x128xf32, #tpu.memory_space<vmem>>, vector<72x128xf32>
    %c0_1 = arith.constant 0 : index
    %c0_2 = arith.constant 0 : index
    %1 = vector.load %arg2[%c0_1, %c0_2] : memref<72x128xf32, #tpu.memory_space<vmem>>, vector<72x128xf32>
    %2 = arith.mulf %0, %1 : vector<72x128xf32>
    %c0_3 = arith.constant 0 : index
    %c0_4 = arith.constant 0 : index
    %3 = vector.load %arg3[%c0_3, %c0_4] : memref<72x128xf32, #tpu.memory_space<vmem>>, vector<72x128xf32>
    tpu.vector_store %arg3[%c0_3, %c0_4], %2 {strides = array<i32>} : memref<72x128xf32, #tpu.memory_space<vmem>>, vector<72x128xf32>,
    return
  }
  func.func @transform_0(%arg0: i32) -> (i32, i32) {
    %c0_i32 = arith.constant 0 : i32
    %c0_i32_0 = arith.constant 0 : i32
    %c0_i32_1 = arith.constant 0 : i32
    return %c0_i32, %c0_i32_0 : i32, i32
  }
  func.func @transform_1(%arg0: i32) -> (i32, i32) {
    %c0_i32 = arith.constant 0 : i32
    %c0_i32_0 = arith.constant 0 : i32
    return %arg0, %c0_i32 : i32, i32
  }
  func.func @transform_2(%arg0: i32) -> (i32, i32) {
    %c0_i32 = arith.constant 0 : i32
    %c0_i32_0 = arith.constant 0 : i32
    return %arg0, %c0_i32 : i32, i32
  }
}

</mosaic_0001>

<bundles_post_ra>
// kernel: tpu_custom_call.1
= control target key start
LH: loop header
LB: loop body
LE: loop exit
PB: predicated region body
PF: predicated region fallthrough
CT: control target
= control target key end

     0   :  { %7 = vsyncpa [#allocation3], 0  ;;  %s236_s0 = inlined_call_operand.hbm [shape: f32[72,128], index: 0, kind: input, shape index: {}]   ;;  %s237_s1 = inlined_call_operand.hbm [shape: f32[72,128], index: 1, kind: input, shape index: {}]   ;;  %s238_s2 = inlined_call_operand.hbm [shape: f32[72,128], index: 2, kind: output, shape index: {}]  }
   0x1   :  { %8 = vsyncpa [#allocation6], 0 }
   0x2   :  { %9 = vsyncpa [#allocation4], 0  ;;  %s171_s9 = smov [#allocation2]   ;;  %s99_s13 = scalar_lea.hbm %s236_s0, 1152 }
   0x3   :  { %s15_s10 = sshll.u32 %s171_s9, 4  ;;  %p100_p0 = scmp.ne.s32.totalorder %s236_s0, %s99_s13  ;;  %s16_s10 = int_to_ptr.vmem [resolvable:$true] %s15_s10 }
   0x4   :  { %p103_p1 = scmp.lt.u32.totalorder %s99_s13, %s236_s0 }
   0x6   :  { %p105_p2 = pnand %p103_p1, %p100_p0 }
   0x8   :  { %108 = shalt.err (!%p105_p2)
}
   0x9   :  { %s109_s18 = scalar_lea.vmem %s16_s10, 1152  ;;  %p114_p4 = scmp.lt.s32.totalorder %s16_s10, %s16_s10 }
   0xa   :  { %p110_p3 = scmp.ne.s32.totalorder %s16_s10, %s109_s18  ;;  %p115_p5 = scmp.lt.s32.totalorder %s109_s18, %s109_s18 }
   0xc   :  { %p116_p6 = por %p115_p5, %p114_p4 }
   0xe   :  { %p117_p7 = pnand %p116_p6, %p110_p3 }
  0x10   :  { %120 = shalt.err (!%p117_p7)
}
  0x11   :  { %s172_s19 = smov 128   ;;  %s173_s20 = smov 8  }
  0x12   :  { %21 = dma.hbm_to_vmem [thread:$0]  %s236_s0, 1152, %s16_s10, [#allocation3], %s172_s19, %s172_s19, %s173_s20  }
  0x13   :  { %s174_s23 = smov [#allocation5]   ;;  %s121_s27 = scalar_lea.hbm %s237_s1, 1152 }
  0x14   :  { %s27_s24 = sshll.u32 %s174_s23, 4  ;;  %p122_p8 = scmp.ne.s32.totalorder %s237_s1, %s121_s27  ;;  %s28_s24 = int_to_ptr.vmem [resolvable:$true] %s27_s24 }
  0x15   :  { %p125_p9 = scmp.lt.u32.totalorder %s121_s27, %s237_s1 }
  0x17   :  { %p127_p10 = pnand %p125_p9, %p122_p8 }
  0x19   :  { %130 = shalt.err (!%p127_p10)
}
  0x1a   :  { %s131_s4 = scalar_lea.vmem %s28_s24, 1152  ;;  %p136_p12 = scmp.lt.s32.totalorder %s28_s24, %s28_s24 }
  0x1b   :  { %p132_p11 = scmp.ne.s32.totalorder %s28_s24, %s131_s4  ;;  %p137_p13 = scmp.lt.s32.totalorder %s131_s4, %s131_s4 }
  0x1d   :  { %p138_p0 = por %p137_p13, %p136_p12 }
  0x1f   :  { %p139_p1 = pnand %p138_p0, %p132_p11 }
  0x21   :  { %142 = shalt.err (!%p139_p1)
}
  0x22   :  { %33 = dma.hbm_to_vmem [thread:$0]  %s237_s1, 1152, %s28_s24, [#allocation6], %s172_s19, %s172_s19, %s173_s20  }
  0x23   :  { %165 = dma.done.wait [#allocation3], 1152  }
  0x24   :  { %166 = vsyncadd [#allocation3], 4294966144 }
  0x25   :  { %167 = dma.done.wait [#allocation6], 1152  }
  0x26   :  { %168 = vsyncadd [#allocation6], 4294966144  ;;  %v40_v0 = vld [vmem:[#allocation2] sm:$0xff]  ;;  %v49_v1 = vld [vmem:[#allocation5] sm:$0xff]  ;;  %s175_s1 = smov [#allocation7]  }
  0x27   :  { %v41_v2 = vld [vmem:[#allocation2 + $0x8] sm:$0xff]  ;;  %v58_v3 = vmul.f32 %v49_v1, %v40_v0  ;;  %v50_v4 = vld [vmem:[#allocation5 + $0x8] sm:$0xff]  ;;  %v51_v6 = vld [vmem:[#allocation5 + $0x10] sm:$0xff]  ;;  %s81_s6 = sshll.u32 %s175_s1, 4  ;;  %s82_s6 = int_to_ptr.vmem [resolvable:$true] %s81_s6 }
  0x28   :  { %v42_v5 = vld [vmem:[#allocation2 + $0x10] sm:$0xff]  ;;  %v59_v7 = vmul.f32 %v50_v4, %v41_v2  ;;  %v43_v9 = vld [vmem:[#allocation2 + $0x18] sm:$0xff]  ;;  %v52_v10 = vld [vmem:[#allocation5 + $0x18] sm:$0xff]  ;;  %s143_s7 = scalar_lea.vmem %s82_s6, 1152  ;;  %p148_p3 = scmp.lt.s32.totalorder %s82_s6, %s82_s6 }
  0x29   :  { %v60_v8 = vmul.f32 %v51_v6, %v42_v5  ;;  %v44_v11 = vld [vmem:[#allocation2 + $0x20] sm:$0xff]  ;;  %67 = vst [vmem:[#allocation7] sm:$0xff] %v58_v3  ;;  %v61_v12 = vmul.f32 %v52_v10, %v43_v9  ;;  %v53_v13 = vld [vmem:[#allocation5 + $0x20] sm:$0xff]  ;;  %v54_v15 = vld [vmem:[#allocation5 + $0x28] sm:$0xff]  ;;  %p144_p2 = scmp.ne.s32.totalorder %s82_s6, %s143_s7  ;;  %p149_p4 = scmp.lt.s32.totalorder %s143_s7, %s143_s7 }
  0x2a   :  { %v45_v14 = vld [vmem:[#allocation2 + $0x28] sm:$0xff]  ;;  %68 = vst [vmem:[#allocation7 + $0x8] sm:$0xff] %v59_v7  ;;  %v62_v16 = vmul.f32 %v53_v13, %v44_v11  ;;  %v46_v18 = vld [vmem:[#allocation2 + $0x30] sm:$0xff]  ;;  %v55_v19 = vld [vmem:[#allocation5 + $0x30] sm:$0xff] }
  0x2b   :  { %69 = vst [vmem:[#allocation7 + $0x10] sm:$0xff] %v60_v8  ;;  %v63_v17 = vmul.f32 %v54_v15, %v45_v14  ;;  %v47_v20 = vld [vmem:[#allocation2 + $0x38] sm:$0xff]  ;;  %70 = vst [vmem:[#allocation7 + $0x18] sm:$0xff] %v61_v12  ;;  %v64_v21 = vmul.f32 %v55_v19, %v46_v18  ;;  %v56_v22 = vld [vmem:[#allocation5 + $0x38] sm:$0xff]  ;;  %p150_p5 = por %p149_p4, %p148_p3 }
  0x2c   :  { %v48_v23 = vld [vmem:[#allocation2 + $0x40] sm:$0xff]  ;;  %v57_v24 = vld [vmem:[#allocation5 + $0x40] sm:$0xff]  ;;  %71 = vst [vmem:[#allocation7 + $0x20] sm:$0xff] %v62_v16  ;;  %v65_v25 = vmul.f32 %v56_v22, %v47_v20 }
  0x2d   :  { %72 = vst [vmem:[#allocation7 + $0x28] sm:$0xff] %v63_v17  ;;  %v66_v26 = vmul.f32 %v57_v24, %v48_v23  ;;  %73 = vst [vmem:[#allocation7 + $0x30] sm:$0xff] %v64_v21  ;;  %p151_p6 = pnand %p150_p5, %p144_p2 }
  0x2e   :  { %74 = vst [vmem:[#allocation7 + $0x38] sm:$0xff] %v65_v25 }
  0x2f   :  { %75 = vst [vmem:[#allocation7 + $0x40] sm:$0xff] %v66_v26 }
  0x30   :  { %154 = shalt.err (!%p151_p6)
}
  0x31   :  { %s155_s10 = scalar_lea.hbm %s238_s2, 1152 }
  0x32   :  { %p156_p7 = scmp.ne.s32.totalorder %s238_s2, %s155_s10  ;;  %p159_p8 = scmp.lt.u32.totalorder %s155_s10, %s238_s2 }
  0x34   :  { %p161_p9 = pnand %p159_p8, %p156_p7 }
  0x36   :  { %164 = shalt.err (!%p161_p9)
}
  0x37   :  { %87 = dma.vmem_to_hbm [thread:$0]  %s82_s6, 1152, %s238_s2, [#allocation4], %s172_s19, %s172_s19, %s173_s20  }
  0x38   :  { %169 = dma.done.wait [#allocation4], 1152  }
  0x39   :  { %170 = vsyncadd [#allocation4], 4294966144 }
  0x3a   :  { %91 = vsyncpa [#allocation3], 1 }
  0x3b   :  { %92 = vsyncpa [#allocation6], 1 }
  0x3c   :  { %93 = vsyncpa [#allocation4], 1 }

</bundles_post_ra>
